<compile_context>
chip_gen: v7x
topology: tpu7x:2x2x1
jax: 0.10.0
libtpu: 0.0.40
codegen_flags: <defaults>
</compile_context>

<pallas_src>
import functools
import math

import jax
import jax.numpy as jnp
from jax.experimental import pallas as pl
from jax.experimental.pallas import tpu as pltpu

HEAD_W = 128          # packed head output width (lane-dense)
_ALPHA_COLS = slice(0, 3)
_BETA_COLS = slice(3, 6)
_V_COL = slice(6, 7)


def _round_up(x, m):
    return ((x + m - 1) // m) * m


def vae_input_kernel(
    x_ref,
    w1_ref, b1_ref,            # fused first layer: (D_pad, 2*H1P), (1, 2*H1P)
    wv2_ref, bv2_ref,          # value layer 2:     (H1P, H2P), (1, H2P)
    wf2_ref, bf2_ref,          # policy layer 2:    (H1P, H2P), (1, H2P)
    whp_ref, whv_ref, bh_ref,  # packed heads:      (H2P, 128), (H2P, 128), (1, 128)
    out_ref,                   # (TILE_B, 128): cols 0:3 alpha, 3:6 beta, 6 v
    *, h1p,
):
    x = x_ref[...]

    # Fused first layers (value || policy): one K=D_pad, N=2*H1P matmul.
    hf1 = jnp.dot(x, w1_ref[...], preferred_element_type=jnp.float32) + b1_ref[...]
    hf1 = jnp.maximum(hf1, 0.0)
    h1 = hf1[:, :h1p]          # value path activations
    f1 = hf1[:, h1p:]          # policy path activations

    # Second layers (separate weights -> two aligned (TILE_B,256)x(256,128) matmuls).
    h2 = jnp.dot(h1, wv2_ref[...], preferred_element_type=jnp.float32) + bv2_ref[...]
    h2 = jnp.maximum(h2, 0.0)
    f2 = jnp.dot(f1, wf2_ref[...], preferred_element_type=jnp.float32) + bf2_ref[...]
    f2 = jnp.maximum(f2, 0.0)

    # Packed heads: alpha/beta come from the policy hidden, v from the value
    # hidden; both projected into one lane-dense (TILE_B, 128) slab.
    z = (jnp.dot(f2, whp_ref[...], preferred_element_type=jnp.float32)
         + jnp.dot(h2, whv_ref[...], preferred_element_type=jnp.float32)
         + bh_ref[...])

    # softplus(z)+1 on alpha/beta columns (0..5); raw z on the v column (6).
    col = jax.lax.broadcasted_iota(jnp.int32, z.shape, dimension=1)
    sp = jnp.maximum(z, 0.0) + jnp.log1p(jnp.exp(-jnp.abs(z))) + 1.0
    out_ref[...] = jnp.where(col < 6, sp, z)


def _pack_params(params):
    """Zero-pad + fuse natural-shaped params into the lane-aligned kernel layout."""
    D = params["wv1"].shape[0]
    H1 = params["wv1"].shape[1]      # 200
    H2 = params["wv2"].shape[1]      # 100
    D_pad = _round_up(D, 128)
    H1P = _round_up(H1, 128)         # 256
    H2P = _round_up(H2, 128)         # 128

    def pad2(w, rows, cols):
        return jnp.pad(w, ((0, rows - w.shape[0]), (0, cols - w.shape[1])))

    # Fused first layer: [value || policy] along N.
    w1 = jnp.concatenate(
        [pad2(params["wv1"], D_pad, H1P), pad2(params["wf1"], D_pad, H1P)], axis=1)
    b1 = jnp.concatenate(
        [pad2(params["bv1"], 1, H1P), pad2(params["bf1"], 1, H1P)], axis=1)

    wv2 = pad2(params["wv2"], H1P, H2P)
    bv2 = pad2(params["bv2"], 1, H2P)
    wf2 = pad2(params["wf2"], H1P, H2P)
    bf2 = pad2(params["bf2"], 1, H2P)

    # Packed heads: policy-side weight (alpha, beta) and value-side weight (v).
    whp = jnp.zeros((H2P, HEAD_W), jnp.float32)
    whp = whp.at[:H2, _ALPHA_COLS].set(params["wa"])
    whp = whp.at[:H2, _BETA_COLS].set(params["wb"])
    whv = jnp.zeros((H2P, HEAD_W), jnp.float32)
    whv = whv.at[:H2, _V_COL].set(params["wv3"])
    bh = jnp.zeros((1, HEAD_W), jnp.float32)
    bh = bh.at[:, _ALPHA_COLS].set(params["ba"])
    bh = bh.at[:, _BETA_COLS].set(params["bb"])
    bh = bh.at[:, _V_COL].set(params["bv3"])

    packed = dict(w1=w1, b1=b1, wv2=wv2, bv2=bv2, wf2=wf2, bf2=bf2,
                  whp=whp, whv=whv, bh=bh)
    dims = dict(D=D, D_pad=D_pad, H1P=H1P, H2P=H2P)
    return packed, dims


def vae_input_net_forward(x, params, *, tile_b=512):
    """x: any shape whose trailing dims flatten to D = z_size*img_stack."""
    D = params["wv1"].shape[0]
    x2d = x.reshape(-1, D).astype(jnp.float32)
    B = x2d.shape[0]

    packed, dims = _pack_params(params)
    D_pad, H1P = dims["D_pad"], dims["H1P"]

    # Batch tiling: tile must be a multiple of 8; weights stay resident.
    tb = min(tile_b, _round_up(B, 8))
    B_pad = _round_up(B, tb)
    x_p = jnp.pad(x2d, ((0, B_pad - B), (0, D_pad - D)))
    grid = (B_pad // tb,)

    weight_order = ("w1", "b1", "wv2", "bv2", "wf2", "bf2", "whp", "whv", "bh")
    weight_args = tuple(packed[k] for k in weight_order)
    weight_specs = [
        pl.BlockSpec(packed[k].shape, lambda i: (0, 0)) for k in weight_order
    ]

    out = pl.pallas_call(
        functools.partial(vae_input_kernel, h1p=H1P),
        out_shape=jax.ShapeDtypeStruct((B_pad, HEAD_W), jnp.float32),
        grid=grid,
        in_specs=[pl.BlockSpec((tb, D_pad), lambda i: (i, 0))] + weight_specs,
        out_specs=pl.BlockSpec((tb, HEAD_W), lambda i: (i, 0)),
        compiler_params=pltpu.CompilerParams(
            dimension_semantics=("parallel",)),
    )(x_p, *weight_args)

    alpha = out[:B, _ALPHA_COLS]
    beta = out[:B, _BETA_COLS]
    v = out[:B, _V_COL]
    return (alpha, beta), v


def init_params(key, z_size, img_stack):
    """Deterministic synthetic init, PyTorch-Linear-style uniform(-1/sqrt(fan_in), ...).

    Weights stored as (in, out); biases stored as (1, out).
    """
    D = z_size * img_stack
    sizes = {
        "wv1": (D, 200), "bv1": (1, 200),
        "wv2": (200, 100), "bv2": (1, 100),
        "wv3": (100, 1), "bv3": (1, 1),
        "wf1": (D, 200), "bf1": (1, 200),
        "wf2": (200, 100), "bf2": (1, 100),
        "wa": (100, 3), "ba": (1, 3),
        "wb": (100, 3), "bb": (1, 3),
    }
    params = {}
    keys = jax.random.split(key, len(sizes))
    for k, (name, shape) in zip(keys, sizes.items()):
        fan_in = shape[0] if name.startswith("w") else sizes["w" + name[1:]][0]
        bound = 1.0 / math.sqrt(fan_in)
        params[name] = jax.random.uniform(
            k, shape, dtype=jnp.float32, minval=-bound, maxval=bound
        )
    return params


def _reference_forward(x, params):
    """Pure-JAX reference for sanity check (matches the PyTorch module)."""
    D = params["wv1"].shape[0]
    x2d = x.reshape(-1, D).astype(jnp.float32)
    relu = lambda t: jnp.maximum(t, 0.0)
    h = relu(x2d @ params["wv1"] + params["bv1"])
    h = relu(h @ params["wv2"] + params["bv2"])
    v = h @ params["wv3"] + params["bv3"]
    f = relu(x2d @ params["wf1"] + params["bf1"])
    f = relu(f @ params["wf2"] + params["bf2"])
    alpha = jax.nn.softplus(f @ params["wa"] + params["ba"]) + 1.0
    beta = jax.nn.softplus(f @ params["wb"] + params["bb"]) + 1.0
    return (alpha, beta), v


if __name__ == "__main__":
    z_size, img_stack = 32, 4
    B = 8

    key = jax.random.PRNGKey(0)
    k_params, k_x = jax.random.split(key)
    params = init_params(k_params, z_size, img_stack)

    # input like the torch module would see before .view(-1, z*stack)
    x = jax.random.normal(k_x, (B, img_stack, z_size), dtype=jnp.float32)

    (alpha, beta), v = vae_input_net_forward(x, params)
    jax.block_until_ready((alpha, beta, v))

    (alpha_ref, beta_ref), v_ref = _reference_forward(x, params)
    assert alpha.shape == (B, 3) and beta.shape == (B, 3) and v.shape == (B, 1)
    assert jnp.allclose(alpha, alpha_ref, atol=1e-5, rtol=1e-5)
    assert jnp.allclose(beta, beta_ref, atol=1e-5, rtol=1e-5)
    assert jnp.allclose(v, v_ref, atol=1e-5, rtol=1e-5)

    print("KERNEL_OK")
</pallas_src>

<mosaic_0001>
module attributes {stable_mosaic.version = 11 : i64} {
  func.func @vae_input_kernel(%arg0: i32, %arg1: memref<8x128xf32, #tpu.memory_space<vmem>>, %arg2: memref<128x512xf32, #tpu.memory_space<vmem>>, %arg3: memref<1x512xf32, #tpu.memory_space<vmem>>, %arg4: memref<256x128xf32, #tpu.memory_space<vmem>>, %arg5: memref<1x128xf32, #tpu.memory_space<vmem>>, %arg6: memref<256x128xf32, #tpu.memory_space<vmem>>, %arg7: memref<1x128xf32, #tpu.memory_space<vmem>>, %arg8: memref<128x128xf32, #tpu.memory_space<vmem>>, %arg9: memref<128x128xf32, #tpu.memory_space<vmem>>, %arg10: memref<1x128xf32, #tpu.memory_space<vmem>>, %arg11: memref<8x128xf32, #tpu.memory_space<vmem>>) attributes {dimension_semantics = [#tpu.dimension_semantics<parallel>], iteration_bounds = array<i64: 1>, scalar_prefetch = 0 : i64, scratch_operands = 0 : i64, tpu.core_type = #tpu.core_type<tc>, window_params = [{transform_indices = @transform_0, window_bounds = array<i64: 8, 128>}, {pipeline_mode = #tpu.pipeline_mode<synchronous>, transform_indices = @transform_1, window_bounds = array<i64: 128, 512>}, {pipeline_mode = #tpu.pipeline_mode<synchronous>, transform_indices = @transform_2, window_bounds = array<i64: 1, 512>}, {pipeline_mode = #tpu.pipeline_mode<synchronous>, transform_indices = @transform_3, window_bounds = array<i64: 256, 128>}, {pipeline_mode = #tpu.pipeline_mode<synchronous>, transform_indices = @transform_4, window_bounds = array<i64: 1, 128>}, {pipeline_mode = #tpu.pipeline_mode<synchronous>, transform_indices = @transform_5, window_bounds = array<i64: 256, 128>}, {pipeline_mode = #tpu.pipeline_mode<synchronous>, transform_indices = @transform_6, window_bounds = array<i64: 1, 128>}, {pipeline_mode = #tpu.pipeline_mode<synchronous>, transform_indices = @transform_7, window_bounds = array<i64: 128, 128>}, {pipeline_mode = #tpu.pipeline_mode<synchronous>, transform_indices = @transform_8, window_bounds = array<i64: 128, 128>}, {pipeline_mode = #tpu.pipeline_mode<synchronous>, transform_indices = @transform_9, window_bounds = array<i64: 1, 128>}, {transform_indices = @transform_10, window_bounds = array<i64: 8, 128>}]} {
    %c0 = arith.constant 0 : index
    %c0_0 = arith.constant 0 : index
    %0 = vector.load %arg1[%c0, %c0_0] : memref<8x128xf32, #tpu.memory_space<vmem>>, vector<8x128xf32>
    %c0_1 = arith.constant 0 : index
    %c0_2 = arith.constant 0 : index
    %1 = vector.load %arg2[%c0_1, %c0_2] : memref<128x512xf32, #tpu.memory_space<vmem>>, vector<128x512xf32>
    %cst = arith.constant dense<0.000000e+00> : vector<8x512xf32>
    %2 = tpu.matmul %0, %1, %cst {dimension_numbers = #tpu.dot_dimension_numbers<[1], [0], [0], [1], [0, 0, 1, 1], [], []>} : vector<8x128xf32>, vector<128x512xf32>, vector<8x512xf32> -> vector<8x512xf32>
    %c0_3 = arith.constant 0 : index
    %c0_4 = arith.constant 0 : index
    %3 = vector.load %arg3[%c0_3, %c0_4] : memref<1x512xf32, #tpu.memory_space<vmem>>, vector<1x512xf32>
    %4 = vector.broadcast %3 : vector<1x512xf32> to vector<8x512xf32>
    %5 = arith.addf %2, %4 : vector<8x512xf32>
    %cst_5 = arith.constant 0.000000e+00 : f32
    %6 = vector.broadcast %cst_5 : f32 to vector<8x512xf32>
    %7 = arith.maximumf %5, %6 : vector<8x512xf32>
    %8 = vector.extract_strided_slice %7 {offsets = [0, 0], sizes = [8, 256], strides = [1, 1]} : vector<8x512xf32> to vector<8x256xf32>
    %9 = vector.extract_strided_slice %7 {offsets = [0, 256], sizes = [8, 256], strides = [1, 1]} : vector<8x512xf32> to vector<8x256xf32>
    %c0_6 = arith.constant 0 : index
    %c0_7 = arith.constant 0 : index
    %10 = vector.load %arg4[%c0_6, %c0_7] : memref<256x128xf32, #tpu.memory_space<vmem>>, vector<256x128xf32>
    %cst_8 = arith.constant dense<0.000000e+00> : vector<8x128xf32>
    %11 = tpu.matmul %8, %10, %cst_8 {dimension_numbers = #tpu.dot_dimension_numbers<[1], [0], [0], [1], [0, 0, 1, 1], [], []>} : vector<8x256xf32>, vector<256x128xf32>, vector<8x128xf32> -> vector<8x128xf32>
    %c0_9 = arith.constant 0 : index
    %c0_10 = arith.constant 0 : index
    %12 = vector.load %arg5[%c0_9, %c0_10] : memref<1x128xf32, #tpu.memory_space<vmem>>, vector<1x128xf32>
    %13 = vector.broadcast %12 : vector<1x128xf32> to vector<8x128xf32>
    %14 = arith.addf %11, %13 : vector<8x128xf32>
    %cst_11 = arith.constant 0.000000e+00 : f32
    %15 = vector.broadcast %cst_11 : f32 to vector<8x128xf32>
    %16 = arith.maximumf %14, %15 : vector<8x128xf32>
    %c0_12 = arith.constant 0 : index
    %c0_13 = arith.constant 0 : index
    %17 = vector.load %arg6[%c0_12, %c0_13] : memref<256x128xf32, #tpu.memory_space<vmem>>, vector<256x128xf32>
    %cst_14 = arith.constant dense<0.000000e+00> : vector<8x128xf32>
    %18 = tpu.matmul %9, %17, %cst_14 {dimension_numbers = #tpu.dot_dimension_numbers<[1], [0], [0], [1], [0, 0, 1, 1], [], []>} : vector<8x256xf32>, vector<256x128xf32>, vector<8x128xf32> -> vector<8x128xf32>
    %c0_15 = arith.constant 0 : index
    %c0_16 = arith.constant 0 : index
    %19 = vector.load %arg7[%c0_15, %c0_16] : memref<1x128xf32, #tpu.memory_space<vmem>>, vector<1x128xf32>
    %20 = vector.broadcast %19 : vector<1x128xf32> to vector<8x128xf32>
    %21 = arith.addf %18, %20 : vector<8x128xf32>
    %cst_17 = arith.constant 0.000000e+00 : f32
    %22 = vector.broadcast %cst_17 : f32 to vector<8x128xf32>
    %23 = arith.maximumf %21, %22 : vector<8x128xf32>
    %c0_18 = arith.constant 0 : index
    %c0_19 = arith.constant 0 : index
    %24 = vector.load %arg8[%c0_18, %c0_19] : memref<128x128xf32, #tpu.memory_space<vmem>>, vector<128x128xf32>
    %cst_20 = arith.constant dense<0.000000e+00> : vector<8x128xf32>
    %25 = tpu.matmul %23, %24, %cst_20 {dimension_numbers = #tpu.dot_dimension_numbers<[1], [0], [0], [1], [0, 0, 1, 1], [], []>} : vector<8x128xf32>, vector<128x128xf32>, vector<8x128xf32> -> vector<8x128xf32>
    %c0_21 = arith.constant 0 : index
    %c0_22 = arith.constant 0 : index
    %26 = vector.load %arg9[%c0_21, %c0_22] : memref<128x128xf32, #tpu.memory_space<vmem>>, vector<128x128xf32>
    %cst_23 = arith.constant dense<0.000000e+00> : vector<8x128xf32>
    %27 = tpu.matmul %16, %26, %cst_23 {dimension_numbers = #tpu.dot_dimension_numbers<[1], [0], [0], [1], [0, 0, 1, 1], [], []>} : vector<8x128xf32>, vector<128x128xf32>, vector<8x128xf32> -> vector<8x128xf32>
    %28 = arith.addf %25, %27 : vector<8x128xf32>
    %c0_24 = arith.constant 0 : index
    %c0_25 = arith.constant 0 : index
    %29 = vector.load %arg10[%c0_24, %c0_25] : memref<1x128xf32, #tpu.memory_space<vmem>>, vector<1x128xf32>
    %30 = vector.broadcast %29 : vector<1x128xf32> to vector<8x128xf32>
    %31 = arith.addf %28, %30 : vector<8x128xf32>
    %32 = tpu.iota {dimensions = array<i32: 1>} : vector<8x128xi32>
    %cst_26 = arith.constant 0.000000e+00 : f32
    %33 = vector.broadcast %cst_26 : f32 to vector<8x128xf32>
    %34 = arith.maximumf %31, %33 : vector<8x128xf32>
    %35 = math.absf %31 : vector<8x128xf32>
    %cst_27 = arith.constant 0.000000e+00 : f32
    %36 = vector.broadcast %cst_27 : f32 to vector<8x128xf32>
    %37 = arith.subf %36, %35 : vector<8x128xf32>
    %38 = math.exp %37 : vector<8x128xf32>
    %39 = math.log1p %38 : vector<8x128xf32>
    %40 = arith.addf %34, %39 : vector<8x128xf32>
    %cst_28 = arith.constant 1.000000e+00 : f32
    %41 = vector.broadcast %cst_28 : f32 to vector<8x128xf32>
    %42 = arith.addf %40, %41 : vector<8x128xf32>
    %c6_i32 = arith.constant 6 : i32
    %43 = vector.broadcast %c6_i32 : i32 to vector<8x128xi32>
    %44 = arith.cmpi slt, %32, %43 : vector<8x128xi32>
    %45 = arith.select %44, %42, %31 : vector<8x128xi1>, vector<8x128xf32>
    %c0_29 = arith.constant 0 : index
    %c0_30 = arith.constant 0 : index
    %46 = vector.load %arg11[%c0_29, %c0_30] : memref<8x128xf32, #tpu.memory_space<vmem>>, vector<8x128xf32>
    tpu.vector_store %arg11[%c0_29, %c0_30], %45 {strides = array<i32>} : memref<8x128xf32, #tpu.memory_space<vmem>>, vector<8x128xf32>,
    return
  }
  func.func @transform_0(%arg0: i32) -> (i32, i32) {
    %c0_i32 = arith.constant 0 : i32
    %c0_i32_0 = arith.constant 0 : i32
    return %arg0, %c0_i32 : i32, i32
  }
  func.func @transform_1(%arg0: i32) -> (i32, i32) {
    %c0_i32 = arith.constant 0 : i32
    %c0_i32_0 = arith.constant 0 : i32
    %c0_i32_1 = arith.constant 0 : i32
    return %c0_i32, %c0_i32_0 : i32, i32
  }
  func.func @transform_2(%arg0: i32) -> (i32, i32) {
    %c0_i32 = arith.constant 0 : i32
    %c0_i32_0 = arith.constant 0 : i32
    %c0_i32_1 = arith.constant 0 : i32
    return %c0_i32, %c0_i32_0 : i32, i32
  }
  func.func @transform_3(%arg0: i32) -> (i32, i32) {
    %c0_i32 = arith.constant 0 : i32
    %c0_i32_0 = arith.constant 0 : i32
    %c0_i32_1 = arith.constant 0 : i32
    return %c0_i32, %c0_i32_0 : i32, i32
  }
  func.func @transform_4(%arg0: i32) -> (i32, i32) {
    %c0_i32 = arith.constant 0 : i32
    %c0_i32_0 = arith.constant 0 : i32
    %c0_i32_1 = arith.constant 0 : i32
    return %c0_i32, %c0_i32_0 : i32, i32
  }
  func.func @transform_5(%arg0: i32) -> (i32, i32) {
    %c0_i32 = arith.constant 0 : i32
    %c0_i32_0 = arith.constant 0 : i32
    %c0_i32_1 = arith.constant 0 : i32
    return %c0_i32, %c0_i32_0 : i32, i32
  }
  func.func @transform_6(%arg0: i32) -> (i32, i32) {
    %c0_i32 = arith.constant 0 : i32
    %c0_i32_0 = arith.constant 0 : i32
    %c0_i32_1 = arith.constant 0 : i32
    return %c0_i32, %c0_i32_0 : i32, i32
  }
  func.func @transform_7(%arg0: i32) -> (i32, i32) {
    %c0_i32 = arith.constant 0 : i32
    %c0_i32_0 = arith.constant 0 : i32
    %c0_i32_1 = arith.constant 0 : i32
    return %c0_i32, %c0_i32_0 : i32, i32
  }
  func.func @transform_8(%arg0: i32) -> (i32, i32) {
    %c0_i32 = arith.constant 0 : i32
    %c0_i32_0 = arith.constant 0 : i32
    %c0_i32_1 = arith.constant 0 : i32
    return %c0_i32, %c0_i32_0 : i32, i32
  }
  func.func @transform_9(%arg0: i32) -> (i32, i32) {
    %c0_i32 = arith.constant 0 : i32
    %c0_i32_0 = arith.constant 0 : i32
    %c0_i32_1 = arith.constant 0 : i32
    return %c0_i32, %c0_i32_0 : i32, i32
  }
  func.func @transform_10(%arg0: i32) -> (i32, i32) {
    %c0_i32 = arith.constant 0 : i32
    %c0_i32_0 = arith.constant 0 : i32
    return %arg0, %c0_i32 : i32, i32
  }
}

</mosaic_0001>

<bundles_post_ra>
// kernel: tpu_custom_call.1
= control target key start
LH: loop header
LB: loop body
LE: loop exit
PB: predicated region body
PF: predicated region fallthrough
CT: control target
= control target key end

     0   :  { %15 = vsyncpa [#allocation3], 0  ;;  %s1522_s0 = inlined_call_operand.hbm [shape: f32[8,128], index: 0, kind: input, shape index: {}]   ;;  %s1523_s1 = inlined_call_operand.hbm [shape: f32[128,512], index: 1, kind: input, shape index: {}]   ;;  %s1524_s2 = inlined_call_operand.vmem [shape: f32[1,512], index: 2, kind: input, shape index: {}]   ;;  %s1525_s3 = inlined_call_operand.hbm [shape: f32[256,128], index: 3, kind: input, shape index: {}]   ;;  %s1526_s4 = inlined_call_operand.vmem [shape: f32[1,128], index: 4, kind: input, shape index: {}]   ;;  %s1527_s5 = inlined_call_operand.hbm [shape: f32[256,128], index: 5, kind: input, shape index: {}]   ;;  %s1528_s6 = inlined_call_operand.vmem [shape: f32[1,128], index: 6, kind: input, shape index: {}]   ;;  %s1529_s7 = inlined_call_operand.hbm [shape: f32[128,128], index: 7, kind: input, shape index: {}]   ;;  %s1530_s8 = inlined_call_operand.hbm [shape: f32[128,128], index: 8, kind: input, shape index: {}]   ;;  %s1531_s9 = inlined_call_operand.vmem [shape: f32[1,128], index: 9, kind: input, shape index: {}]   ;;  %s1532_s10 = inlined_call_operand.hbm [shape: f32[8,128], index: 10, kind: output, shape index: {}]  }
   0x1   :  { %16 = vsyncpa [#allocation6], 0 }
   0x2   :  { %17 = vsyncpa [#allocation9], 0 }
   0x3   :  { %18 = vsyncpa [#allocation12], 0 }
   0x4   :  { %19 = vsyncpa [#allocation4], 0  ;;  %s1323_s13 = smov [#allocation5]   ;;  %s1159_s17 = scalar_lea.hbm %s1523_s1, 8192 }
   0x5   :  { %s35_s14 = sshll.u32 %s1323_s13, 4  ;;  %p1160_p0 = scmp.ne.s32.totalorder %s1523_s1, %s1159_s17  ;;  %s36_s14 = int_to_ptr.vmem [resolvable:$true] %s35_s14 }
   0x6   :  { %p1163_p1 = scmp.lt.u32.totalorder %s1159_s17, %s1523_s1 }
   0x8   :  { %p1165_p2 = pnand %p1163_p1, %p1160_p0 }
   0xa   :  { %1168 = shalt.err (!%p1165_p2)
}
   0xb   :  { %s1169_s22 = scalar_lea.vmem %s36_s14, 8192  ;;  %p1174_p4 = scmp.lt.s32.totalorder %s36_s14, %s36_s14 }
   0xc   :  { %p1170_p3 = scmp.ne.s32.totalorder %s36_s14, %s1169_s22  ;;  %p1175_p5 = scmp.lt.s32.totalorder %s1169_s22, %s1169_s22 }
   0xe   :  { %p1176_p6 = por %p1175_p5, %p1174_p4 }
  0x10   :  { %p1177_p7 = pnand %p1176_p6, %p1170_p3 }
  0x12   :  { %1180 = shalt.err (!%p1177_p7)
}
  0x13   :  { %s1324_s23 = smov 512   ;;  %s1325_s24 = smov 32  }
  0x14   :  { %41 = dma.hbm_to_vmem [thread:$0]  %s1523_s1, 8192, %s36_s14, [#allocation6], %s1324_s23, %s1324_s23, %s1325_s24  }
  0x15   :  { %s1326_s27 = smov [#allocation8]   ;;  %s1327_s29 = smov [#allocation2]  }
  0x16   :  { %s63_s28 = sshll.u32 %s1326_s27, 4  ;;  %s26_s30 = sshll.u32 %s1327_s29, 4  ;;  %s64_s28 = int_to_ptr.vmem [resolvable:$true] %s63_s28  ;;  %s27_s30 = int_to_ptr.vmem [resolvable:$true] %s26_s30 }
  0x17   :  { %s1181_s13 = scalar_lea.hbm %s1527_s5, 4096 }
  0x18   :  { %p1182_p8 = scmp.ne.s32.totalorder %s1527_s5, %s1181_s13  ;;  %p1185_p9 = scmp.lt.u32.totalorder %s1181_s13, %s1527_s5 }
  0x1a   :  { %p1187_p10 = pnand %p1185_p9, %p1182_p8 }
  0x1c   :  { %1190 = shalt.err (!%p1187_p10)
}
  0x1d   :  { %s1191_s1 = scalar_lea.vmem %s64_s28, 4096  ;;  %p1196_p12 = scmp.lt.s32.totalorder %s64_s28, %s64_s28 }
  0x1e   :  { %p1192_p11 = scmp.ne.s32.totalorder %s64_s28, %s1191_s1  ;;  %p1197_p13 = scmp.lt.s32.totalorder %s1191_s1, %s1191_s1 }
  0x20   :  { %p1198_p0 = por %p1197_p13, %p1196_p12 }
  0x22   :  { %p1199_p1 = pnand %p1198_p0, %p1192_p11 }
  0x24   :  { %1202 = shalt.err (!%p1199_p1)
}
  0x25   :  { %s1328_s14 = smov 128   ;;  %s1329_s19 = smov 8  }
  0x26   :  { %69 = dma.hbm_to_vmem [thread:$0]  %s1527_s5, 4096, %s64_s28, [#allocation9], %s1328_s14, %s1328_s14, %s1329_s19  }
  0x27   :  { %s1203_s24 = scalar_lea.hbm %s1522_s0, 128 }
  0x28   :  { %p1204_p2 = scmp.ne.s32.totalorder %s1522_s0, %s1203_s24  ;;  %p1207_p3 = scmp.lt.u32.totalorder %s1203_s24, %s1522_s0 }
  0x2a   :  { %p1209_p4 = pnand %p1207_p3, %p1204_p2 }
  0x2c   :  { %1212 = shalt.err (!%p1209_p4)
}
  0x2d   :  { %s1213_s11 = scalar_lea.vmem %s27_s30, 128  ;;  %p1218_p6 = scmp.lt.s32.totalorder %s27_s30, %s27_s30 }
  0x2e   :  { %p1214_p5 = scmp.ne.s32.totalorder %s27_s30, %s1213_s11  ;;  %p1219_p7 = scmp.lt.s32.totalorder %s1213_s11, %s1213_s11 }
  0x30   :  { %p1220_p8 = por %p1219_p7, %p1218_p6 }
  0x32   :  { %p1221_p9 = pnand %p1220_p8, %p1214_p5 }
  0x34   :  { %1224 = shalt.err (!%p1221_p9)
}
  0x35   :  { %29 = dma.hbm_to_vmem [thread:$0]  %s1522_s0, 128, %s27_s30, [#allocation3]  }
  0x36   :  { %s1330_s12 = smov [#allocation7]   ;;  %s1331_s15 = smov [#allocation10]  }
  0x37   :  { %s49_s13 = sshll.u32 %s1330_s12, 4  ;;  %s77_s16 = sshll.u32 %s1331_s15, 4  ;;  %s50_s13 = int_to_ptr.vmem [resolvable:$true] %s49_s13  ;;  %s78_s16 = int_to_ptr.vmem [resolvable:$true] %s77_s16 }
  0x38   :  { %s1225_s1 = scalar_lea.hbm %s1525_s3, 4096 }
  0x39   :  { %p1226_p10 = scmp.ne.s32.totalorder %s1525_s3, %s1225_s1  ;;  %p1229_p11 = scmp.lt.u32.totalorder %s1225_s1, %s1525_s3 }
  0x3b   :  { %p1231_p12 = pnand %p1229_p11, %p1226_p10 }
  0x3d   :  { %1234 = shalt.err (!%p1231_p12)
}
  0x3e   :  { %s1235_s0 = scalar_lea.vmem %s50_s13, 4096  ;;  %p1240_p0 = scmp.lt.s32.totalorder %s50_s13, %s50_s13 }
  0x3f   :  { %p1236_p13 = scmp.ne.s32.totalorder %s50_s13, %s1235_s0  ;;  %p1241_p1 = scmp.lt.s32.totalorder %s1235_s0, %s1235_s0 }
  0x41   :  { %p1242_p2 = por %p1241_p1, %p1240_p0 }
  0x43   :  { %p1243_p3 = pnand %p1242_p2, %p1236_p13 }
  0x45   :  { %1246 = shalt.err (!%p1243_p3)
}
  0x46   :  { %55 = dma.hbm_to_vmem [thread:$0]  %s1525_s3, 4096, %s50_s13, [#allocation6], %s1328_s14, %s1328_s14, %s1329_s19  }
  0x47   :  { %s1247_s27 = scalar_lea.hbm %s1529_s7, 2048 }
  0x48   :  { %p1248_p4 = scmp.ne.s32.totalorder %s1529_s7, %s1247_s27  ;;  %p1251_p5 = scmp.lt.u32.totalorder %s1247_s27, %s1529_s7 }
  0x4a   :  { %p1253_p6 = pnand %p1251_p5, %p1248_p4 }
  0x4c   :  { %1256 = shalt.err (!%p1253_p6)
}
  0x4d   :  { %s1257_s12 = scalar_lea.vmem %s78_s16, 2048  ;;  %p1262_p8 = scmp.lt.s32.totalorder %s78_s16, %s78_s16 }
  0x4e   :  { %p1258_p7 = scmp.ne.s32.totalorder %s78_s16, %s1257_s12  ;;  %p1263_p9 = scmp.lt.s32.totalorder %s1257_s12, %s1257_s12 }
  0x50   :  { %p1264_p10 = por %p1263_p9, %p1262_p8 }
  0x52   :  { %p1265_p11 = pnand %p1264_p10, %p1258_p7 }
  0x54   :  { %1268 = shalt.err (!%p1265_p11)
}
  0x55   :  { %83 = dma.hbm_to_vmem [thread:$0]  %s1529_s7, 2048, %s78_s16, [#allocation9], %s1328_s14, %s1328_s14, %s1329_s19  }
  0x56   :  { %s1332_s15 = smov [#allocation11]   ;;  %s1269_s20 = scalar_lea.hbm %s1530_s8, 2048 }
  0x57   :  { %s89_s17 = sshll.u32 %s1332_s15, 4  ;;  %p1270_p12 = scmp.ne.s32.totalorder %s1530_s8, %s1269_s20  ;;  %s90_s17 = int_to_ptr.vmem [resolvable:$true] %s89_s17 }
  0x58   :  { %p1273_p13 = scmp.lt.u32.totalorder %s1269_s20, %s1530_s8 }
  0x5a   :  { %p1275_p0 = pnand %p1273_p13, %p1270_p12 }
  0x5c   :  { %1278 = shalt.err (!%p1275_p0)
}
  0x5d   :  { %s1279_s30 = scalar_lea.vmem %s90_s17, 2048  ;;  %p1284_p2 = scmp.lt.s32.totalorder %s90_s17, %s90_s17 }
  0x5e   :  { %p1280_p1 = scmp.ne.s32.totalorder %s90_s17, %s1279_s30  ;;  %p1285_p3 = scmp.lt.s32.totalorder %s1279_s30, %s1279_s30 }
  0x60   :  { %p1286_p4 = por %p1285_p3, %p1284_p2 }
  0x62   :  { %p1287_p5 = pnand %p1286_p4, %p1280_p1 }
  0x64   :  { %1290 = shalt.err (!%p1287_p5)
}
  0x65   :  { %95 = dma.hbm_to_vmem [thread:$0]  %s1530_s8, 2048, %s90_s17, [#allocation12], %s1328_s14, %s1328_s14, %s1329_s19  }
  0x66   :  { %1313 = dma.done.wait [#allocation3], 128  }
  0x67   :  { %1314 = vsyncadd [#allocation3], 4294967168 }
  0x68   :  { %1315 = dma.done.wait [#allocation6], 12288  }
  0x69   :  { %1316 = vsyncadd [#allocation6], 4294955008 }
  0x6a   :  { %1317 = dma.done.wait [#allocation9], 6144  }
  0x6b   :  { %1318 = vsyncadd [#allocation9], 4294961152 }
  0x6c   :  { %1319 = dma.done.wait [#allocation12], 2048  }
  0x6d   :  { %1320 = vsyncadd [#allocation12], 4294965248  ;;  %v1333_v0 = vmov 0.0   ;;  %v118_v1 = vld [vmem:[#allocation5 + $0x8] sm:$0xff]  ;;  %v120_v3 = vld [vmem:[#allocation5 + $0x18] sm:$0xff]  ;;  %vm1335_vm0 = vmmov 0  }
  0x6e   :  { %267 = vmatprep.mubr.f32.mxu0 %v1333_v0  ;;  %338 = vmatprep.mubr.f32.mxu1 %v1333_v0  ;;  %v122_v2 = vld [vmem:[#allocation5 + $0x28] sm:$0xff]  ;;  %v124_v5 = vld [vmem:[#allocation5 + $0x38] sm:$0xff]  ;;  %v117_v6 = vld [vmem:[#allocation5] sm:$0xff] }
  0x6f   :  { %v965_v4 = vpack.c.bf16 %v122_v2, %v118_v1  ;;  %v121_v7 = vld [vmem:[#allocation5 + $0x20] sm:$0xff]  ;;  %v997_v8 = vpack.c.bf16 %v124_v5, %v120_v3  ;;  %v119_v10 = vld [vmem:[#allocation5 + $0x10] sm:$0xff]  ;;  %v126_v12 = vld [vmem:[#allocation5 + $0x48] sm:$0xff] }
  0x70   :  { %v967_v9 = vpack.c.bf16 %v121_v7, %v117_v6  ;;  %v123_v11 = vld [vmem:[#allocation5 + $0x30] sm:$0xff]  ;;  %v130_v14 = vld [vmem:[#allocation5 + $0x68] sm:$0xff]  ;;  %v128_v15 = vld [vmem:[#allocation5 + $0x58] sm:$0xff] }
  0x71   :  { %966 = vmatprep.subr.bf16.mxu0 %v965_v4  ;;  %v999_v13 = vpack.c.bf16 %v123_v11, %v119_v10  ;;  %v132_v16 = vld [vmem:[#allocation5 + $0x78] sm:$0xff]  ;;  %998 = vmatprep.subr.bf16.mxu1 %v997_v8  ;;  %v969_v17 = vpack.c.bf16 %v130_v14, %v126_v12  ;;  %v125_v19 = vld [vmem:[#allocation5 + $0x40] sm:$0xff]  ;;  %v127_v21 = vld [vmem:[#allocation5 + $0x50] sm:$0xff] }
  0x72   :  { %968 = vmatpush1.bf16.msra.mxu0 %v967_v9  ;;  %v1001_v18 = vpack.c.bf16 %v132_v16, %v128_v15  ;;  %v129_v20 = vld [vmem:[#allocation5 + $0x60] sm:$0xff]  ;;  %v131_v23 = vld [vmem:[#allocation5 + $0x70] sm:$0xff]  ;;  %v134_v24 = vld [vmem:[#allocation5 + $0x88] sm:$0xff] }
  0x73   :  { %1000 = vmatpush1.bf16.msra.mxu1 %v999_v13  ;;  %v971_v22 = vpack.c.bf16 %v129_v20, %v125_v19  ;;  %v138_v25 = vld [vmem:[#allocation5 + $0xa8] sm:$0xff]  ;;  %970 = vmatprep.subr.bf16.mxu0 %v969_v17  ;;  %v1003_v26 = vpack.c.bf16 %v131_v23, %v127_v21  ;;  %v136_v28 = vld [vmem:[#allocation5 + $0x98] sm:$0xff]  ;;  %v133_v30 = vld [vmem:[#allocation5 + $0x80] sm:$0xff] }
  0x74   :  { %1002 = vmatprep.subr.bf16.mxu1 %v1001_v18  ;;  %v973_v27 = vpack.c.bf16 %v138_v25, %v134_v24  ;;  %v140_v29 = vld [vmem:[#allocation5 + $0xb8] sm:$0xff]  ;;  %v137_v32 = vld [vmem:[#allocation5 + $0xa0] sm:$0xff]  ;;  %v135_v33 = vld [vmem:[#allocation5 + $0x90] sm:$0xff] }
  0x75   :  { %v1005_v31 = vpack.c.bf16 %v140_v29, %v136_v28  ;;  %v139_v34 = vld [vmem:[#allocation5 + $0xb0] sm:$0xff]  ;;  %v975_v35 = vpack.c.bf16 %v137_v32, %v133_v30  ;;  %v142_v36 = vld [vmem:[#allocation5 + $0xc8] sm:$0xff]  ;;  %v144_v38 = vld [vmem:[#allocation5 + $0xd8] sm:$0xff] }
  0x76   :  { %972 = vmatpush1.bf16.msra.mxu0 %v971_v22  ;;  %v146_v37 = vld [vmem:[#allocation5 + $0xe8] sm:$0xff]  ;;  %v1007_v39 = vpack.c.bf16 %v139_v34, %v135_v33  ;;  %v148_v41 = vld [vmem:[#allocation5 + $0xf8] sm:$0xff]  ;;  %v141_v42 = vld [vmem:[#allocation5 + $0xc0] sm:$0xff] }
  0x77   :  { %1004 = vmatpush1.bf16.msra.mxu1 %v1003_v26  ;;  %974 = vmatprep.subr.bf16.mxu0 %v973_v27  ;;  %v977_v40 = vpack.c.bf16 %v146_v37, %v142_v36  ;;  %v145_v43 = vld [vmem:[#allocation5 + $0xe0] sm:$0xff]  ;;  %v1009_v44 = vpack.c.bf16 %v148_v41, %v144_v38  ;;  %v143_v45 = vld [vmem:[#allocation5 + $0xd0] sm:$0xff]  ;;  %v150_v47 = vld [vmem:[#allocation5 + $0x108] sm:$0xff] }
  0x78   :  { %1006 = vmatprep.subr.bf16.mxu1 %v1005_v31  ;;  %v147_v46 = vld [vmem:[#allocation5 + $0xf0] sm:$0xff]  ;;  %v154_v48 = vld [vmem:[#allocation5 + $0x128] sm:$0xff]  ;;  %v152_v49 = vld [vmem:[#allocation5 + $0x118] sm:$0xff]  ;;  %v979_v51 = vpack.c.bf16 %v145_v43, %v141_v42 }
  0x79   :  { %v156_v50 = vld [vmem:[#allocation5 + $0x138] sm:$0xff]  ;;  %v1011_v52 = vpack.c.bf16 %v147_v46, %v143_v45  ;;  %v981_v53 = vpack.c.bf16 %v154_v48, %v150_v47  ;;  %v149_v54 = vld [vmem:[#allocation5 + $0x100] sm:$0xff]  ;;  %v151_v56 = vld [vmem:[#allocation5 + $0x110] sm:$0xff] }
  0x7a   :  { %976 = vmatpush1.bf16.msra.mxu0 %v975_v35  ;;  %v153_v55 = vld [vmem:[#allocation5 + $0x120] sm:$0xff]  ;;  %v1013_v57 = vpack.c.bf16 %v156_v50, %v152_v49  ;;  %v155_v58 = vld [vmem:[#allocation5 + $0x130] sm:$0xff]  ;;  %v158_v59 = vld [vmem:[#allocation5 + $0x148] sm:$0xff] }
  0x7b   :  { %1008 = vmatpush1.bf16.msra.mxu1 %v1007_v39  ;;  %978 = vmatprep.subr.bf16.mxu0 %v977_v40  ;;  %v162_v60 = vld [vmem:[#allocation5 + $0x168] sm:$0xff]  ;;  %v160_v61 = vld [vmem:[#allocation5 + $0x158] sm:$0xff]  ;;  %v983_v63 = vpack.c.bf16 %v153_v55, %v149_v54  ;;  %v1015_v1 = vpack.c.bf16 %v155_v58, %v151_v56  ;;  %v157_v3 = vld [vmem:[#allocation5 + $0x140] sm:$0xff] }
  0x7c   :  { %1010 = vmatprep.subr.bf16.mxu1 %v1009_v44  ;;  %v164_v62 = vld [vmem:[#allocation5 + $0x178] sm:$0xff]  ;;  %v985_v2 = vpack.c.bf16 %v162_v60, %v158_v59  ;;  %v161_v4 = vld [vmem:[#allocation5 + $0x160] sm:$0xff]  ;;  %v159_v5 = vld [vmem:[#allocation5 + $0x150] sm:$0xff] }
  0x7d   :  { %v1017_v6 = vpack.c.bf16 %v164_v62, %v160_v61  ;;  %v163_v7 = vld [vmem:[#allocation5 + $0x170] sm:$0xff]  ;;  %v166_v8 = vld [vmem:[#allocation5 + $0x188] sm:$0xff]  ;;  %v168_v10 = vld [vmem:[#allocation5 + $0x198] sm:$0xff]  ;;  %v987_v12 = vpack.c.bf16 %v161_v4, %v157_v3 }
  0x7e   :  { %980 = vmatpush1.bf16.msra.mxu0 %v979_v51  ;;  %v170_v9 = vld [vmem:[#allocation5 + $0x1a8] sm:$0xff]  ;;  %v172_v11 = vld [vmem:[#allocation5 + $0x1b8] sm:$0xff]  ;;  %v1019_v13 = vpack.c.bf16 %v163_v7, %v159_v5  ;;  %v165_v15 = vld [vmem:[#allocation5 + $0x180] sm:$0xff] }
  0x7f   :  { %1012 = vmatpush1.bf16.msra.mxu1 %v1011_v52  ;;  %982 = vmatprep.subr.bf16.mxu0 %v981_v53  ;;  %v989_v14 = vpack.c.bf16 %v170_v9, %v166_v8  ;;  %v169_v16 = vld [vmem:[#allocation5 + $0x1a0] sm:$0xff]  ;;  %v167_v17 = vld [vmem:[#allocation5 + $0x190] sm:$0xff]  ;;  %v1021_v18 = vpack.c.bf16 %v172_v11, %v168_v10  ;;  %v174_v20 = vld [vmem:[#allocation5 + $0x1c8] sm:$0xff] }
  0x80   :  { %1014 = vmatprep.subr.bf16.mxu1 %v1013_v57  ;;  %v171_v19 = vld [vmem:[#allocation5 + $0x1b0] sm:$0xff]  ;;  %v178_v21 = vld [vmem:[#allocation5 + $0x1e8] sm:$0xff]  ;;  %v176_v22 = vld [vmem:[#allocation5 + $0x1d8] sm:$0xff]  ;;  %v991_v24 = vpack.c.bf16 %v169_v16, %v165_v15 }
  0x81   :  { %v180_v23 = vld [vmem:[#allocation5 + $0x1f8] sm:$0xff]  ;;  %v1023_v25 = vpack.c.bf16 %v171_v19, %v167_v17  ;;  %v993_v26 = vpack.c.bf16 %v178_v21, %v174_v20  ;;  %v173_v27 = vld [vmem:[#allocation5 + $0x1c0] sm:$0xff]  ;;  %v175_v29 = vld [vmem:[#allocation5 + $0x1d0] sm:$0xff] }
  0x82   :  { %984 = vmatpush1.bf16.msra.mxu0 %v983_v63  ;;  %v177_v28 = vld [vmem:[#allocation5 + $0x1e0] sm:$0xff]  ;;  %v1025_v30 = vpack.c.bf16 %v180_v23, %v176_v22  ;;  %v179_v31 = vld [vmem:[#allocation5 + $0x1f0] sm:$0xff]  ;;  %v366_v33 = vld [vmem:[#allocation7 + $0x88] sm:$0xff] }
  0x83   :  { %1016 = vmatpush1.bf16.msra.mxu1 %v1015_v1  ;;  %986 = vmatprep.subr.bf16.mxu0 %v985_v2  ;;  %v365_v32 = vld [vmem:[#allocation7 + $0x80] sm:$0xff]  ;;  %v476_v35 = vld [vmem:[#allocation8 + $0x88] sm:$0xff]  ;;  %v995_v36 = vpack.c.bf16 %v177_v28, %v173_v27  ;;  %v1027_v37 = vpack.c.bf16 %v179_v31, %v175_v29  ;;  %v367_v44 = vld [vmem:[#allocation7 + $0x90] sm:$0xff] }
  0x84   :  { %1018 = vmatprep.subr.bf16.mxu1 %v1017_v6  ;;  %v475_v34 = vld [vmem:[#allocation8 + $0x80] sm:$0xff]  ;;  %v1029_v38 = vpack.c.bf16 %v366_v33, %v365_v32  ;;  %v350_v40 = vld [vmem:[#allocation7 + $0x8] sm:$0xff]  ;;  %v368_v45 = vld [vmem:[#allocation7 + $0x98] sm:$0xff] }
  0x85   :  { %v349_v39 = vld [vmem:[#allocation7] sm:$0xff]  ;;  %v1061_v42 = vpack.c.bf16 %v476_v35, %v475_v34  ;;  %v460_v43 = vld [vmem:[#allocation8 + $0x8] sm:$0xff]  ;;  %v477_v46 = vld [vmem:[#allocation8 + $0x90] sm:$0xff]  ;;  %v1033_v51 = vpack.c.bf16 %v368_v45, %v367_v44 }
  0x86   :  { %988 = vmatpush1.bf16.msra.mxu0 %v987_v12  ;;  %v459_v41 = vld [vmem:[#allocation8] sm:$0xff]  ;;  %v478_v47 = vld [vmem:[#allocation8 + $0x98] sm:$0xff]  ;;  %v1031_v49 = vpack.c.bf16 %v350_v40, %v349_v39  ;;  %v351_v52 = vld [vmem:[#allocation7 + $0x10] sm:$0xff] }
  0x87   :  { %1020 = vmatpush1.bf16.msra.mxu1 %v1019_v13  ;;  %990 = vmatprep.subr.bf16.mxu0 %v989_v14  ;;  %v116_v48 = vld [vmem:[#allocation2] sm:$0xff]  ;;  %v1063_v50 = vpack.c.bf16 %v460_v43, %v459_v41  ;;  %v461_v54 = vld [vmem:[#allocation8 + $0x10] sm:$0xff]  ;;  %v1065_v55 = vpack.c.bf16 %v478_v47, %v477_v46  ;;  %v369_v57 = vld [vmem:[#allocation7 + $0xa0] sm:$0xff] }
  0x88   :  { %1022 = vmatprep.subr.bf16.mxu1 %v1021_v18  ;;  %v352_v53 = vld [vmem:[#allocation7 + $0x18] sm:$0xff]  ;;  %v370_v58 = vld [vmem:[#allocation7 + $0xa8] sm:$0xff]  ;;  %v479_v59 = vld [vmem:[#allocation8 + $0xa0] sm:$0xff] }
  0x89   :  { %v462_v56 = vld [vmem:[#allocation8 + $0x18] sm:$0xff]  ;;  %v480_v60 = vld [vmem:[#allocation8 + $0xa8] sm:$0xff]  ;;  %v1035_v61 = vpack.c.bf16 %v352_v53, %v351_v52  ;;  %v1037_v63 = vpack.c.bf16 %v370_v58, %v369_v57  ;;  %v353_v1 = vld [vmem:[#allocation7 + $0x20] sm:$0xff] }
  0x8a   :  { %992 = vmatpush1.bf16.msra.mxu0 %v991_v24  ;;  %v1067_v62 = vpack.c.bf16 %v462_v56, %v461_v54  ;;  %v354_v2 = vld [vmem:[#allocation7 + $0x28] sm:$0xff]  ;;  %v463_v3 = vld [vmem:[#allocation8 + $0x20] sm:$0xff]  ;;  %v1069_v4 = vpack.c.bf16 %v480_v60, %v479_v59  ;;  %v371_v6 = vld [vmem:[#allocation7 + $0xb0] sm:$0xff] }
  0x8b   :  { %1024 = vmatpush1.bf16.msra.mxu1 %v1023_v25  ;;  %994 = vmatprep.subr.bf16.mxu0 %v993_v26  ;;  %v464_v5 = vld [vmem:[#allocation8 + $0x28] sm:$0xff]  ;;  %v372_v7 = vld [vmem:[#allocation7 + $0xb8] sm:$0xff]  ;;  %v481_v8 = vld [vmem:[#allocation8 + $0xb0] sm:$0xff]  ;;  %v1039_v10 = vpack.c.bf16 %v354_v2, %v353_v1 }
  0x8c   :  { %1026 = vmatprep.subr.bf16.mxu1 %v1025_v30  ;;  %v482_v9 = vld [vmem:[#allocation8 + $0xb8] sm:$0xff]  ;;  %v1071_v11 = vpack.c.bf16 %v464_v5, %v463_v3  ;;  %v1041_v12 = vpack.c.bf16 %v372_v7, %v371_v6  ;;  %v355_v13 = vld [vmem:[#allocation7 + $0x30] sm:$0xff]  ;;  %v373_v18 = vld [vmem:[#allocation7 + $0xc0] sm:$0xff]  ;;  %v1334_v5 = vmov 0.0|0.0   ;;  %v183_v6 = vlaneseq }
  0x8d   :  { %v356_v14 = vld [vmem:[#allocation7 + $0x38] sm:$0xff]  ;;  %v465_v15 = vld [vmem:[#allocation8 + $0x30] sm:$0xff]  ;;  %v1073_v16 = vpack.c.bf16 %v482_v9, %v481_v8  ;;  %v374_v19 = vld [vmem:[#allocation7 + $0xc8] sm:$0xff] }
  0x8e   :  { %996 = vmatpush1.bf16.msra.mxu0 %v995_v36  ;;  %v466_v17 = vld [vmem:[#allocation8 + $0x38] sm:$0xff]  ;;  %v483_v20 = vld [vmem:[#allocation8 + $0xc0] sm:$0xff]  ;;  %v484_v21 = vld [vmem:[#allocation8 + $0xc8] sm:$0xff]  ;;  %v1043_v22 = vpack.c.bf16 %v356_v14, %v355_v13  ;;  %v1045_v24 = vpack.c.bf16 %v374_v19, %v373_v18  ;;  %v184_v7 = vshrl.u32 %v183_v6, 7 }
  0x8f   :  { %1028 = vmatpush1.bf16.msra.mxu1 %v1027_v37  ;;  %1030 = vmatprep.subr.bf16.mxu0 %v1029_v38  ;;  %v1075_v23 = vpack.c.bf16 %v466_v17, %v465_v15  ;;  %v357_v25 = vld [vmem:[#allocation7 + $0x40] sm:$0xff]  ;;  %v358_v26 = vld [vmem:[#allocation7 + $0x48] sm:$0xff]  ;;  %v1077_v28 = vpack.c.bf16 %v484_v21, %v483_v20  ;;  %v375_v30 = vld [vmem:[#allocation7 + $0xd0] sm:$0xff] }
  0x90   :  { %1062 = vmatprep.subr.bf16.mxu1 %v1061_v42  ;;  %v467_v27 = vld [vmem:[#allocation8 + $0x40] sm:$0xff]  ;;  %v468_v29 = vld [vmem:[#allocation8 + $0x48] sm:$0xff]  ;;  %v376_v31 = vld [vmem:[#allocation7 + $0xd8] sm:$0xff]  ;;  %v1047_v34 = vpack.c.bf16 %v358_v26, %v357_v25  ;;  %v185_v8 = vsub.s32 0, %v184_v7 }
  0x91   :  { %268 = vmatmul.mubr.f32.vlgmr.msra.gmra.mrb[0].mxu0 %v116_v48  ;;  %v485_v32 = vld [vmem:[#allocation8 + $0xd0] sm:$0xff]  ;;  %v486_v33 = vld [vmem:[#allocation8 + $0xd8] sm:$0xff]  ;;  %v1079_v35 = vpack.c.bf16 %v468_v29, %v467_v27  ;;  %v1049_v36 = vpack.c.bf16 %v376_v31, %v375_v30  ;;  %v377_v42 = vld [vmem:[#allocation7 + $0xe0] sm:$0xff] }
  0x92   :  { %339 = vmatmul.mubr.f32.vlgmr.msra.gmra.mrb[0].mxu1 %v116_v48  ;;  %1032 = vmatpush3.bf16.msra.mxu0 %v1031_v49  ;;  %v359_v37 = vld [vmem:[#allocation7 + $0x50] sm:$0xff]  ;;  %v360_v38 = vld [vmem:[#allocation7 + $0x58] sm:$0xff]  ;;  %v1081_v40 = vpack.c.bf16 %v486_v33, %v485_v32  ;;  %v378_v43 = vld [vmem:[#allocation7 + $0xe8] sm:$0xff] }
  0x93   :  { %1064 = vmatpush3.bf16.msra.mxu1 %v1063_v50  ;;  %1034 = vmatprep.subr.bf16.mxu0 %v1033_v51  ;;  %v469_v39 = vld [vmem:[#allocation8 + $0x50] sm:$0xff]  ;;  %v470_v41 = vld [vmem:[#allocation8 + $0x58] sm:$0xff]  ;;  %v487_v44 = vld [vmem:[#allocation8 + $0xe0] sm:$0xff]  ;;  %v1051_v46 = vpack.c.bf16 %v360_v38, %v359_v37  ;;  %v1053_v48 = vpack.c.bf16 %v378_v43, %v377_v42 }
  0x94   :  { %1066 = vmatprep.subr.bf16.mxu1 %v1065_v55  ;;  %v488_v45 = vld [vmem:[#allocation8 + $0xe8] sm:$0xff]  ;;  %v1083_v47 = vpack.c.bf16 %v470_v41, %v469_v39  ;;  %v361_v50 = vld [vmem:[#allocation7 + $0x60] sm:$0xff]  ;;  %v379_v56 = vld [vmem:[#allocation7 + $0xf0] sm:$0xff] }
  0x95   :  { %v1085_v49 = vpack.c.bf16 %v488_v45, %v487_v44  ;;  %v362_v51 = vld [vmem:[#allocation7 + $0x68] sm:$0xff]  ;;  %v471_v52 = vld [vmem:[#allocation8 + $0x60] sm:$0xff]  ;;  %v380_v57 = vld [vmem:[#allocation7 + $0xf8] sm:$0xff] }
  0x96   :  { %1036 = vmatpush3.bf16.msra.mxu0 %v1035_v61  ;;  %v1055_v53 = vpack.c.bf16 %v362_v51, %v361_v50  ;;  %v472_v54 = vld [vmem:[#allocation8 + $0x68] sm:$0xff]  ;;  %v489_v58 = vld [vmem:[#allocation8 + $0xf0] sm:$0xff]  ;;  %v1057_v59 = vpack.c.bf16 %v380_v57, %v379_v56  ;;  %v490_v60 = vld [vmem:[#allocation8 + $0xf8] sm:$0xff] }
  0x97   :  { %1068 = vmatpush3.bf16.msra.mxu1 %v1067_v62  ;;  %1038 = vmatprep.subr.bf16.mxu0 %v1037_v63  ;;  %v1087_v55 = vpack.c.bf16 %v472_v54, %v471_v52  ;;  %v363_v61 = vld [vmem:[#allocation7 + $0x70] sm:$0xff]  ;;  %v364_v62 = vld [vmem:[#allocation7 + $0x78] sm:$0xff]  ;;  %v1089_v63 = vpack.c.bf16 %v490_v60, %v489_v58  ;;  %v585_v21 = vld [vmem:[#allocation11] sm:$0xff] }
  0x98   :  { %1070 = vmatprep.subr.bf16.mxu1 %v1069_v4  ;;  %v1059_v1 = vpack.c.bf16 %v364_v62, %v363_v61  ;;  %v473_v2 = vld [vmem:[#allocation8 + $0x70] sm:$0xff]  ;;  %v474_v3 = vld [vmem:[#allocation8 + $0x78] sm:$0xff]  ;;  %v569_v26 = vld [vmem:[#allocation10] sm:$0xff] }
  0x99   :  { %v1091_v4 = vpack.c.bf16 %v474_v3, %v473_v2  ;;  %v181_v9 = vld [vmem:[%s1524_s2] sm:$0xf]  ;;  %v570_v27 = vld [vmem:[#allocation10 + $0x8] sm:$0xff]  ;;  %v571_v37 = vld [vmem:[#allocation10 + $0x10] sm:$0xff] }
  0x9a   :  { %1040 = vmatpush3.bf16.msra.mxu0 %v1039_v10  ;;  %v193_v10 = vsub.s32 2, %v184_v7  ;;  %v186_v13 = vrot.slane %v181_v9, %v185_v8  ;;  %v1118_v33 = vpack.c.bf16 %v570_v27, %v569_v26  ;;  %v572_v38 = vld [vmem:[#allocation10 + $0x18] sm:$0xff]  ;;  %v589_v41 = vld [vmem:[#allocation11 + $0x20] sm:$0xff]  ;;  %v590_v42 = vld [vmem:[#allocation11 + $0x28] sm:$0xff] }
  0x9b   :  { %1072 = vmatpush3.bf16.msra.mxu1 %v1071_v11  ;;  %1042 = vmatprep.subr.bf16.mxu0 %v1041_v12  ;;  %v189_v11 = vsub.s32 1, %v184_v7  ;;  %v197_v12 = vsub.s32 3, %v184_v7  ;;  %v573_v43 = vld [vmem:[#allocation10 + $0x20] sm:$0xff]  ;;  %v574_v44 = vld [vmem:[#allocation10 + $0x28] sm:$0xff]  ;;  %v1100_v45 = vpack.c.bf16 %v590_v42, %v589_v41  ;;  %v576_v50 = vld [vmem:[#allocation10 + $0x38] sm:$0xff]  ;;  %v750_v42 = vand.u32 127, %v183_v6 }
  0x9c   :  { %1074 = vmatprep.subr.bf16.mxu1 %v1073_v16  ;;  %v194_v14 = vrot.slane %v181_v9, %v193_v10  ;;  %v594_v54 = vld [vmem:[#allocation11 + $0x48] sm:$0xff]  ;;  %v596_v60 = vld [vmem:[#allocation11 + $0x58] sm:$0xff]  ;;  %v579_v61 = vld [vmem:[#allocation10 + $0x50] sm:$0xff] }
  0x9d   :  { %v190_v15 = vrot.slane %v181_v9, %v189_v11  ;;  %v198_v16 = vrot.slane %v181_v9, %v197_v12  ;;  %v578_v56 = vld [vmem:[#allocation10 + $0x48] sm:$0xff]  ;;  %v580_v62 = vld [vmem:[#allocation10 + $0x58] sm:$0xff]  ;;  %v597_v2 = vld [vmem:[#allocation11 + $0x60] sm:$0xff]  ;;  %vm767_vm2 = vcmp.lt.s32.totalorder %v750_v42, 6 }
  0x9e   :  { %1044 = vmatpush3.bf16.msra.mxu0 %v1043_v22  ;;  %v586_v22 = vld [vmem:[#allocation11 + $0x8] sm:$0xff]  ;;  %v599_v10 = vld [vmem:[#allocation11 + $0x70] sm:$0xff]  ;;  %v600_v11 = vld [vmem:[#allocation11 + $0x78] sm:$0xff] }
  0x9f   :  { %1076 = vmatpush3.bf16.msra.mxu1 %v1075_v23  ;;  %1046 = vmatprep.subr.bf16.mxu0 %v1045_v24  ;;  %v1094_v30 = vpack.c.bf16 %v586_v22, %v585_v21  ;;  %v598_v3 = vld [vmem:[#allocation11 + $0x68] sm:$0xff]  ;;  %v583_v12 = vld [vmem:[#allocation10 + $0x70] sm:$0xff] }
  0xa0   :  { %1078 = vmatprep.subr.bf16.mxu1 %v1077_v28  ;;  %v1112_v7 = vpack.c.bf16 %v598_v3, %v597_v2  ;;  %v582_v8 = vld [vmem:[#allocation10 + $0x68] sm:$0xff] }
  0xa2   :  { %1048 = vmatpush3.bf16.msra.mxu0 %v1047_v34  ;;  %v587_v34 = vld [vmem:[#allocation11 + $0x10] sm:$0xff] }
  0xa3   :  { %1080 = vmatpush3.bf16.msra.mxu1 %v1079_v35  ;;  %1050 = vmatprep.subr.bf16.mxu0 %v1049_v36  ;;  %v588_v35 = vld [vmem:[#allocation11 + $0x18] sm:$0xff] }
  0xa4   :  { %1082 = vmatprep.subr.bf16.mxu1 %v1081_v40  ;;  %v1097_v39 = vpack.c.bf16 %v588_v35, %v587_v34  ;;  %v1121_v40 = vpack.c.bf16 %v572_v38, %v571_v37 }
  0xa6   :  { %1052 = vmatpush3.bf16.msra.mxu0 %v1051_v46  ;;  %v1124_v46 = vpack.c.bf16 %v574_v44, %v573_v43 }
  0xa7   :  { %1084 = vmatpush3.bf16.msra.mxu1 %v1083_v47  ;;  %1054 = vmatprep.subr.bf16.mxu0 %v1053_v48  ;;  %v591_v47 = vld [vmem:[#allocation11 + $0x30] sm:$0xff]  ;;  %v592_v48 = vld [vmem:[#allocation11 + $0x38] sm:$0xff] }
  0xa8   :  { %1086 = vmatprep.subr.bf16.mxu1 %v1085_v49  ;;  %v575_v49 = vld [vmem:[#allocation10 + $0x30] sm:$0xff]  ;;  %v1103_v51 = vpack.c.bf16 %v592_v48, %v591_v47 }
  0xa9   :  { %v1127_v52 = vpack.c.bf16 %v576_v50, %v575_v49 }
  0xaa   :  { %1056 = vmatpush3.bf16.msra.mxu0 %v1055_v53  ;;  %v593_v53 = vld [vmem:[#allocation11 + $0x40] sm:$0xff] }
  0xab   :  { %1088 = vmatpush3.bf16.msra.mxu1 %v1087_v55  ;;  %1058 = vmatprep.subr.bf16.mxu0 %v1057_v59  ;;  %v577_v55 = vld [vmem:[#allocation10 + $0x40] sm:$0xff]  ;;  %v1106_v57 = vpack.c.bf16 %v594_v54, %v593_v53  ;;  %v595_v59 = vld [vmem:[#allocation11 + $0x50] sm:$0xff] }
  0xac   :  { %1090 = vmatprep.subr.bf16.mxu1 %v1089_v63  ;;  %v1130_v58 = vpack.c.bf16 %v578_v56, %v577_v55  ;;  %v1109_v63 = vpack.c.bf16 %v596_v60, %v595_v59 }
  0xae   :  { %1060 = vmatpush3.bf16.msra.mxu0 %v1059_v1  ;;  %v1133_v1 = vpack.c.bf16 %v580_v62, %v579_v61 }
  0xaf   :  { %1092 = vmatpush3.bf16.msra.mxu1 %v1091_v4  ;;  %1093 = vmatprep.subr.bf16.mxu0 %v1334_v5  ;;  %v581_v4 = vld [vmem:[#allocation10 + $0x60] sm:$0xff] }
  0xb0   :  { %1117 = vmatprep.subr.bf16.mxu1 %v1334_v5  ;;  %v1136_v9 = vpack.c.bf16 %v582_v8, %v581_v4 }
 0x164   :  { %v269_v17 = vpop.f32.mrb[0].mxu0 }
 0x165   :  { %v270_v18 = vadd.f32 %v269_v17, %v186_v13  ;;  %v340_v19 = vpop.f32.mrb[0].mxu1  ;;  %v271_v20 = vpop.f32.mrb[1].mxu0  ;;  %v1115_v13 = vpack.c.bf16 %v600_v11, %v599_v10 }
 0x166   :  { %v341_v23 = vadd.f32 %v340_v19, %v194_v14  ;;  %v272_v24 = vadd.f32 %v271_v20, %v190_v15  ;;  %v342_v25 = vpop.f32.mrb[1].mxu1  ;;  %v584_v14 = vld [vmem:[#allocation10 + $0x78] sm:$0xff] }
 0x167   :  { %v343_v28 = vadd.f32 %v342_v25, %v198_v16  ;;  %v345_v31 = vmax.f32 %v270_v18, 0.0  ;;  %v1139_v15 = vpack.c.bf16 %v584_v14, %v583_v12  ;;  %v788_v18 = vld [vmem:[%s1526_s4] ss:$0 sm:$0xff]  ;;  %s1336_s4 = smov [#allocation13]  }
 0x168   :  { %v346_v29 = vmax.f32 %v272_v24, 0.0  ;;  %v347_v36 = vmax.f32 %v341_v23, 0.0 }
 0x169   :  { %v348_v32 = vmax.f32 %v343_v28, 0.0  ;;  %v790_v28 = vld [vmem:[%s1531_s9] ss:$0 sm:$0xff] }
 0x16a   :  { %452 = vmatprep.mubr.f32.mxu0 %v346_v29 }
 0x16b   :  { %562 = vmatprep.mubr.f32.mxu1 %v348_v32  ;;  %453 = vmatmul.mubr.f32.vlgmr.msra.gmra.mrb[2].mxu0 %v345_v31 }
 0x16c   :  { %563 = vmatmul.mubr.f32.vlgmr.msra.gmra.mrb[2].mxu1 %v347_v36  ;;  %1095 = vmatpush3.bf16.msra.mxu0 %v1094_v30 }
 0x16d   :  { %1119 = vmatpush3.bf16.msra.mxu1 %v1118_v33  ;;  %1096 = vmatprep.subr.bf16.mxu0 %v1334_v5 }
 0x16e   :  { %1120 = vmatprep.subr.bf16.mxu1 %v1334_v5  ;;  %927 = vmatprep.mubr.msk.f32.mxu0 %vm1335_vm0, %v1333_v0 }
 0x16f   :  { %962 = vmatprep.mubr.msk.f32.mxu1 %vm1335_vm0, %v1333_v0 }
 0x170   :  { %1098 = vmatpush3.bf16.msra.mxu0 %v1097_v39 }
 0x171   :  { %1122 = vmatpush3.bf16.msra.mxu1 %v1121_v40  ;;  %1099 = vmatprep.subr.bf16.mxu0 %v1334_v5 }
 0x172   :  { %1123 = vmatprep.subr.bf16.mxu1 %v1334_v5 }
 0x174   :  { %1101 = vmatpush3.bf16.msra.mxu0 %v1100_v45 }
 0x175   :  { %1125 = vmatpush3.bf16.msra.mxu1 %v1124_v46  ;;  %1102 = vmatprep.subr.bf16.mxu0 %v1334_v5 }
 0x176   :  { %1126 = vmatprep.subr.bf16.mxu1 %v1334_v5 }
 0x178   :  { %1104 = vmatpush3.bf16.msra.mxu0 %v1103_v51 }
 0x179   :  { %1128 = vmatpush3.bf16.msra.mxu1 %v1127_v52  ;;  %1105 = vmatprep.subr.bf16.mxu0 %v1334_v5 }
 0x17a   :  { %1129 = vmatprep.subr.bf16.mxu1 %v1334_v5 }
 0x17c   :  { %1107 = vmatpush3.bf16.msra.mxu0 %v1106_v57 }
 0x17d   :  { %1131 = vmatpush3.bf16.msra.mxu1 %v1130_v58  ;;  %1108 = vmatprep.subr.bf16.mxu0 %v1334_v5 }
 0x17e   :  { %1132 = vmatprep.subr.bf16.mxu1 %v1334_v5 }
 0x180   :  { %1110 = vmatpush3.bf16.msra.mxu0 %v1109_v63 }
 0x181   :  { %1134 = vmatpush3.bf16.msra.mxu1 %v1133_v1  ;;  %1111 = vmatprep.subr.bf16.mxu0 %v1334_v5 }
 0x182   :  { %1135 = vmatprep.subr.bf16.mxu1 %v1334_v5 }
 0x184   :  { %1113 = vmatpush3.bf16.msra.mxu0 %v1112_v7 }
 0x185   :  { %1137 = vmatpush3.bf16.msra.mxu1 %v1136_v9  ;;  %1114 = vmatprep.subr.bf16.mxu0 %v1334_v5 }
 0x186   :  { %1138 = vmatprep.subr.bf16.mxu1 %v1334_v5  ;;  %v789_v5 = vld [vmem:[%s1528_s6] ss:$0 sm:$0xff]  ;;  %s776_s6 = sshll.u32 %s1336_s4, 4  ;;  %s777_s6 = int_to_ptr.vmem [resolvable:$true] %s776_s6 }
 0x187   :  { %s1291_s9 = scalar_lea.vmem %s777_s6, 128  ;;  %p1296_p7 = scmp.lt.s32.totalorder %s777_s6, %s777_s6 }
 0x188   :  { %1116 = vmatpush3.bf16.msra.mxu0 %v1115_v13  ;;  %p1292_p6 = scmp.ne.s32.totalorder %s777_s6, %s1291_s9  ;;  %p1297_p8 = scmp.lt.s32.totalorder %s1291_s9, %s1291_s9 }
 0x189   :  { %1140 = vmatpush3.bf16.msra.mxu1 %v1139_v15 }
 0x18a   :  { %p1298_p9 = por %p1297_p8, %p1296_p7 }
 0x18c   :  { %p1299_p10 = pnand %p1298_p9, %p1292_p6 }
 0x23e   :  { %v823_v16 = vpop.f32.mrb[2].mxu0 }
 0x23f   :  { %v858_v17 = vpop.f32.mrb[2].mxu1  ;;  %v824_v19 = vpop.f32.mrb[3].mxu0 }
 0x240   :  { %v825_v20 = vadd.f32 %v824_v19, %v823_v16  ;;  %v859_v21 = vpop.f32.mrb[3].mxu1 }
 0x241   :  { %v860_v22 = vadd.f32 %v859_v21, %v858_v17 }
 0x242   :  { %v455_v23 = vadd.f32 %v825_v20, %v788_v18 }
 0x243   :  { %v565_v24 = vadd.f32 %v860_v22, %v789_v5 }
 0x244   :  { %v458_v25 = vmax.f32 %v455_v23, 0.0 }
 0x245   :  { %v568_v26 = vmax.f32 %v565_v24, 0.0 }
 0x246   :  { %928 = vmatmul.mubr.f32.vlgmr.msra.gmra.mrb[4].mxu0 %v458_v25 }
 0x247   :  { %963 = vmatmul.mubr.f32.vlgmr.msra.gmra.mrb[4].mxu1 %v568_v26 }
 0x319   :  { %v667_v0 = vpop.f32.mrb[4].mxu0 }
 0x31a   :  { %v737_v27 = vpop.f32.mrb[4].mxu1  ;;  %v929_v29 = vpop.f32.mrb[5].mxu0 }
 0x31b   :  { %v738_v30 = vadd.f32 %v737_v27, %v667_v0  ;;  %v964_v31 = vpop.f32.mrb[5].mxu1 }
 0x31d   :  { %v748_v32 = vadd.f32 %v790_v28, %v738_v30 }
 0x31f   :  { %v752_v33 = vand.u32 2147483647, %v748_v32  ;;  %v751_v45 = vmax.f32 %v748_v32, 0.0 }
 0x321   :  { %v753_v34 = vsub.f32 0.0, %v752_v33 }
 0x323   :  { %v754_v35 = vmul.f32 1.442695, %v753_v34 }
 0x325   :  { %1155 = vpow2.f32 %v754_v35 }
 0x32f   :  { %v1156_v36 = vpop.eup %1155 }
 0x330   :  { %v756_v37 = vadd.f32 1.0, %v1156_v36  ;;  %v759_v38 = vmul.f32 -0.5, %v1156_v36  ;;  %v762_v40 = vand.u32 2147483647, %v1156_v36 }
 0x332   :  { %1157 = vlog2.f32 %v756_v37  ;;  %v760_v39 = vadd.f32 1.0, %v759_v38  ;;  %vm763_vm1 = vcmp.lt.f32.partialorder %v762_v40, 0.0004427343 }
 0x334   :  { %v761_v44 = vmul.f32 %v1156_v36, %v760_v39 }
 0x33c   :  { %v1158_v41 = vpop.eup %1157 }
 0x33d   :  { %v758_v43 = vmul.f32 0.6931472, %v1158_v41 }
 0x33f   :  { %v764_v46 = vsel %vm763_vm1, %v761_v44, %v758_v43 }
 0x340   :  { %v765_v47 = vadd.f32 %v764_v46, %v751_v45 }
 0x342   :  { %v766_v48 = vadd.f32 1.0, %v765_v47 }
 0x344   :  { %v768_v49 = vsel %vm767_vm2, %v766_v48, %v748_v32 }
 0x345   :  { %769 = vst [vmem:[#allocation13] sm:$0xff] %v768_v49 }
 0x346   :  { %1302 = shalt.err (!%p1299_p10)
}
 0x347   :  { %s1303_s5 = scalar_lea.hbm %s1532_s10, 128 }
 0x348   :  { %p1304_p11 = scmp.ne.s32.totalorder %s1532_s10, %s1303_s5  ;;  %p1307_p12 = scmp.lt.u32.totalorder %s1303_s5, %s1532_s10 }
 0x34a   :  { %p1309_p13 = pnand %p1307_p12, %p1304_p11 }
 0x34c   :  { %1312 = shalt.err (!%p1309_p13)
}
 0x34d   :  { %779 = dma.vmem_to_hbm [thread:$0]  %s777_s6, 128, %s1532_s10, [#allocation4]  }
 0x34e   :  { %1321 = dma.done.wait [#allocation4], 128  }
 0x34f   :  { %1322 = vsyncadd [#allocation4], 4294967168 }
 0x350   :  { %783 = vsyncpa [#allocation3], 1 }
 0x351   :  { %784 = vsyncpa [#allocation6], 1 }
 0x352   :  { %785 = vsyncpa [#allocation9], 1 }
 0x353   :  { %786 = vsyncpa [#allocation12], 1 }
 0x354   :  { %787 = vsyncpa [#allocation4], 1 }

</bundles_post_ra>
